<compile_context>
chip_gen: v6e
topology: v6e:2x2x1
jax: 0.10.0
libtpu: 0.0.40
codegen_flags: <defaults>
</compile_context>

<pallas_src>
from typing import NamedTuple

import jax
import jax.numpy as jnp
from jax.experimental import pallas as pl
from jax.experimental.pallas import tpu as pltpu

LANE = 128


def _round_up(x: int, m: int) -> int:
    return (x + m - 1) // m * m


def _default_num_batch_tiles() -> int:
    """One batch tile per TensorCore: v7x has 2 TCs per device, v5e/v6e have 1."""
    try:
        kind = jax.devices()[0].device_kind.lower()
    except Exception:
        return 1
    return 2 if "v7" in kind else 1


def teacher_kernel(x_ref, w1_ref, b1_ref, w2_ref, b2_ref, w3_ref, b3_ref, o_ref):
    cdt = w1_ref.dtype
    # In-kernel cast of the raw f32 x tile (cheap VPU work hidden under MXU work).
    x = x_ref[...].astype(cdt)
    # Layer 1: Linear + ReLU (MXU matmul, f32 accumulation; bias/ReLU in f32).
    h1 = jnp.dot(x, w1_ref[...], preferred_element_type=jnp.float32)
    h1 = jnp.maximum(h1 + b1_ref[...], 0.0)
    # Layer 2: Linear + ReLU.
    h2 = jnp.dot(h1.astype(cdt), w2_ref[...], preferred_element_type=jnp.float32)
    h2 = jnp.maximum(h2 + b2_ref[...], 0.0)
    # Layer 3: Linear (logits, no activation).
    out = jnp.dot(h2.astype(cdt), w3_ref[...], preferred_element_type=jnp.float32)
    o_ref[...] = (out + b3_ref[...]).astype(o_ref.dtype)


class PreparedTeacherParams(NamedTuple):
    w1: jax.Array  # [input_dim, d_h]   (output dim lane-padded, K left raw)
    b1: jax.Array  # [1, d_h] f32
    w2: jax.Array  # [d_h, d_half]
    b2: jax.Array  # [1, d_half] f32
    w3: jax.Array  # [d_half, d_out]
    b3: jax.Array  # [1, d_out] f32
    input_dim: int
    num_classes: int


def prepare_teacher_params(w1, b1, w2, b2, w3, b3, *, compute_dtype=jnp.bfloat16):
    """One-time prep: lane-pad + cast the constant weights/biases (hoisted off hot path).

    Weights are stored [in, out] (PyTorch W.T) so the kernel computes x @ W + b.
    Zero padding is consistent across layers: padded columns of W_l / b_l stay zero
    through ReLU and feed zero rows of W_{l+1}.
    """
    input_dim, hidden_dim = w1.shape
    half_dim = w2.shape[1]
    num_classes = w3.shape[1]

    d_h = _round_up(hidden_dim, LANE)
    d_half = _round_up(half_dim, LANE)
    d_out = _round_up(num_classes, LANE)

    def pad2(a, rows, cols, dtype):
        return jnp.pad(a, ((0, rows - a.shape[0]), (0, cols - a.shape[1]))).astype(dtype)

    w1p = pad2(w1, input_dim, d_h, compute_dtype)   # K = input_dim left raw; Mosaic pads.
    w2p = pad2(w2, d_h, d_half, compute_dtype)
    w3p = pad2(w3, d_half, d_out, compute_dtype)
    b1p = jnp.pad(b1, (0, d_h - hidden_dim)).reshape(1, d_h).astype(jnp.float32)
    b2p = jnp.pad(b2, (0, d_half - half_dim)).reshape(1, d_half).astype(jnp.float32)
    b3p = jnp.pad(b3, (0, d_out - num_classes)).reshape(1, d_out).astype(jnp.float32)

    return PreparedTeacherParams(w1p, b1p, w2p, b2p, w3p, b3p, input_dim, num_classes)


def teacher_forward(x, prep: PreparedTeacherParams, *,
                    num_batch_tiles: int | None = None,
                    out_dtype=jnp.float32):
    """Fused 3-layer MLP forward: x [B, input_dim] -> logits [B, num_classes]."""
    B, input_dim = x.shape
    assert input_dim == prep.input_dim

    d_h = prep.w1.shape[1]
    d_half = prep.w2.shape[1]
    d_out = prep.w3.shape[1]
    cdt = prep.w1.dtype
    cbytes = jnp.dtype(cdt).itemsize
    obytes = jnp.dtype(out_dtype).itemsize

    if num_batch_tiles is None:
        num_batch_tiles = _default_num_batch_tiles()

    # One tile per TensorCore; tile rows aligned to the f32 sublane pack (8).
    block_batch = _round_up(pl.cdiv(B, num_batch_tiles), 8)
    Bp = block_batch * num_batch_tiles
    if Bp != B:
        x = jnp.pad(x, ((0, Bp - B), (0, 0)))
    grid = (num_batch_tiles,)

    # ---- Explicit VMEM budget: single-buffered resident weights/biases, double-buffered
    # x/out tiles, f32 intermediates.  Tight (~2x need + 2 MiB), capped at 64 MiB (v7x).
    weight_bytes = (input_dim * d_h + d_h * d_half + d_half * d_out) * cbytes
    bias_bytes = (d_h + d_half + d_out) * 4
    io_bytes = 2 * block_batch * input_dim * 4 + 2 * block_batch * d_out * obytes
    act_bytes = block_batch * (d_h + d_half + d_out) * 4
    vmem_needed = weight_bytes + bias_bytes + io_bytes + act_bytes
    vmem_limit = int(min(64 << 20, max(2 * vmem_needed + (2 << 20), 4 << 20)))
    # TODO(synk): full-weight VMEM residency only holds while bf16 weights + I/O tiles +
    # f32 intermediates fit ~half of v7x's 64 MiB/core (~25M bf16 params).  Past that, add
    # a K-reduction grid axis ("arbitrary") with an f32 VMEM accumulator / block W over d_h
    # instead of relying on this cap (it only limits the request, it doesn't restructure).

    flops = 2 * Bp * (input_dim * d_h + d_h * d_half + d_half * d_out)
    bytes_accessed = (Bp * input_dim * 4 + weight_bytes + bias_bytes + Bp * d_out * obytes)
    cost = pl.CostEstimate(flops=flops, transcendentals=0, bytes_accessed=bytes_accessed)

    # Whole-array, VMEM-resident (single copy, fetched once) for constant weights/biases.
    resident = pl.BlockSpec(memory_space=pltpu.MemorySpace.VMEM)

    out_padded = pl.pallas_call(
        teacher_kernel,
        out_shape=jax.ShapeDtypeStruct((Bp, d_out), out_dtype),
        grid_spec=pltpu.PrefetchScalarGridSpec(
            num_scalar_prefetch=0,
            grid=grid,
            in_specs=[
                # Raw x tile: last dim equals full array dim (legal under the (8,128) rule).
                pl.BlockSpec((block_batch, input_dim), lambda i: (i, 0)),
                resident, resident,   # W1, b1
                resident, resident,   # W2, b2
                resident, resident,   # W3, b3
            ],
            out_specs=pl.BlockSpec((block_batch, d_out), lambda i: (i, 0)),
        ),
        compiler_params=pltpu.CompilerParams(
            dimension_semantics=("parallel",),
            vmem_limit_bytes=vmem_limit,
        ),
        cost_estimate=cost,
    )(x, prep.w1, prep.b1, prep.w2, prep.b2, prep.w3, prep.b3)

    return out_padded[:B, :prep.num_classes]


def init_teacher_params(key, input_dim, num_classes, hidden_dim):
    """Deterministic init mimicking nn.Linear's uniform(-1/sqrt(fan_in), 1/sqrt(fan_in)).

    Weights are returned already transposed to [in, out] for the kernel layout.
    """
    half_dim = hidden_dim // 2
    ks = jax.random.split(key, 6)

    def lin(kw, kb, fan_in, fan_out):
        bound = 1.0 / jnp.sqrt(fan_in)
        w = jax.random.uniform(kw, (fan_in, fan_out), jnp.float32, -bound, bound)
        b = jax.random.uniform(kb, (fan_out,), jnp.float32, -bound, bound)
        return w, b

    w1, b1 = lin(ks[0], ks[1], input_dim, hidden_dim)
    w2, b2 = lin(ks[2], ks[3], hidden_dim, half_dim)
    w3, b3 = lin(ks[4], ks[5], half_dim, num_classes)
    return w1, b1, w2, b2, w3, b3


if __name__ == "__main__":
    key = jax.random.PRNGKey(0)
    k_x, k_p = jax.random.split(key)

    # Small shapes consistent with Teacher(input_dim, num_classes, hidden_dim=256) on tabular data.
    batch, input_dim, hidden_dim, num_classes = 256, 23, 256, 2

    x = jax.random.normal(k_x, (batch, input_dim), jnp.float32)
    w1, b1, w2, b2, w3, b3 = init_teacher_params(k_p, input_dim, num_classes, hidden_dim)

    # Pure-JAX reference of the same semantics.
    ref = jnp.maximum(x @ w1 + b1, 0.0)
    ref = jnp.maximum(ref @ w2 + b2, 0.0)
    ref = ref @ w3 + b3

    # 1) f32 path: same numerics as the PyTorch module.
    prep_f32 = prepare_teacher_params(w1, b1, w2, b2, w3, b3, compute_dtype=jnp.float32)
    out_f32 = jax.block_until_ready(teacher_forward(x, prep_f32))
    assert out_f32.shape == (batch, num_classes)
    assert jnp.allclose(out_f32, ref, atol=1e-3, rtol=1e-3), "f32 mismatch vs reference"

    # 2) bf16 fast path (MXU-native operands, f32 accumulation); looser tolerance.
    prep_bf16 = prepare_teacher_params(w1, b1, w2, b2, w3, b3, compute_dtype=jnp.bfloat16)
    out_bf16 = jax.block_until_ready(teacher_forward(x, prep_bf16))
    max_err = float(jnp.max(jnp.abs(out_bf16 - ref)))
    assert max_err < 5e-2, f"bf16 mismatch vs reference (max abs err {max_err})"

    print("KERNEL_OK")
</pallas_src>

<mosaic_0001>
module attributes {stable_mosaic.version = 11 : i64} {
  func.func @teacher_kernel(%arg0: i32, %arg1: memref<256x23xf32, #tpu.memory_space<vmem>>, %arg2: memref<23x256xf32, #tpu.memory_space<vmem>>, %arg3: memref<1x256xf32, #tpu.memory_space<vmem>>, %arg4: memref<256x128xf32, #tpu.memory_space<vmem>>, %arg5: memref<1x128xf32, #tpu.memory_space<vmem>>, %arg6: memref<128x128xf32, #tpu.memory_space<vmem>>, %arg7: memref<1x128xf32, #tpu.memory_space<vmem>>, %arg8: memref<256x128xf32, #tpu.memory_space<vmem>>) attributes {dimension_semantics = [#tpu.dimension_semantics<parallel>], iteration_bounds = array<i64: 1>, scalar_prefetch = 0 : i64, scratch_operands = 0 : i64, tpu.core_type = #tpu.core_type<tc>, window_params = [{transform_indices = @transform_0, window_bounds = array<i64: 256, 23>}, {pipeline_mode = #tpu.pipeline_mode<synchronous>, transform_indices = @transform_1, window_bounds = array<i64: 23, 256>}, {pipeline_mode = #tpu.pipeline_mode<synchronous>, transform_indices = @transform_2, window_bounds = array<i64: 1, 256>}, {pipeline_mode = #tpu.pipeline_mode<synchronous>, transform_indices = @transform_3, window_bounds = array<i64: 256, 128>}, {pipeline_mode = #tpu.pipeline_mode<synchronous>, transform_indices = @transform_4, window_bounds = array<i64: 1, 128>}, {pipeline_mode = #tpu.pipeline_mode<synchronous>, transform_indices = @transform_5, window_bounds = array<i64: 128, 128>}, {pipeline_mode = #tpu.pipeline_mode<synchronous>, transform_indices = @transform_6, window_bounds = array<i64: 1, 128>}, {transform_indices = @transform_7, window_bounds = array<i64: 256, 128>}]} {
    %c0 = arith.constant 0 : index
    %c0_0 = arith.constant 0 : index
    %0 = vector.load %arg1[%c0, %c0_0] : memref<256x23xf32, #tpu.memory_space<vmem>>, vector<256x23xf32>
    %c0_1 = arith.constant 0 : index
    %c0_2 = arith.constant 0 : index
    %1 = vector.load %arg2[%c0_1, %c0_2] : memref<23x256xf32, #tpu.memory_space<vmem>>, vector<23x256xf32>
    %cst = arith.constant dense<0.000000e+00> : vector<256x256xf32>
    %2 = tpu.matmul %0, %1, %cst {dimension_numbers = #tpu.dot_dimension_numbers<[1], [0], [0], [1], [0, 0, 1, 1], [], []>} : vector<256x23xf32>, vector<23x256xf32>, vector<256x256xf32> -> vector<256x256xf32>
    %c0_3 = arith.constant 0 : index
    %c0_4 = arith.constant 0 : index
    %3 = vector.load %arg3[%c0_3, %c0_4] : memref<1x256xf32, #tpu.memory_space<vmem>>, vector<1x256xf32>
    %4 = vector.broadcast %3 : vector<1x256xf32> to vector<256x256xf32>
    %5 = arith.addf %2, %4 : vector<256x256xf32>
    %cst_5 = arith.constant 0.000000e+00 : f32
    %6 = vector.broadcast %cst_5 : f32 to vector<256x256xf32>
    %7 = arith.maximumf %5, %6 : vector<256x256xf32>
    %c0_6 = arith.constant 0 : index
    %c0_7 = arith.constant 0 : index
    %8 = vector.load %arg4[%c0_6, %c0_7] : memref<256x128xf32, #tpu.memory_space<vmem>>, vector<256x128xf32>
    %cst_8 = arith.constant dense<0.000000e+00> : vector<256x128xf32>
    %9 = tpu.matmul %7, %8, %cst_8 {dimension_numbers = #tpu.dot_dimension_numbers<[1], [0], [0], [1], [0, 0, 1, 1], [], []>} : vector<256x256xf32>, vector<256x128xf32>, vector<256x128xf32> -> vector<256x128xf32>
    %c0_9 = arith.constant 0 : index
    %c0_10 = arith.constant 0 : index
    %10 = vector.load %arg5[%c0_9, %c0_10] : memref<1x128xf32, #tpu.memory_space<vmem>>, vector<1x128xf32>
    %11 = vector.broadcast %10 : vector<1x128xf32> to vector<256x128xf32>
    %12 = arith.addf %9, %11 : vector<256x128xf32>
    %cst_11 = arith.constant 0.000000e+00 : f32
    %13 = vector.broadcast %cst_11 : f32 to vector<256x128xf32>
    %14 = arith.maximumf %12, %13 : vector<256x128xf32>
    %c0_12 = arith.constant 0 : index
    %c0_13 = arith.constant 0 : index
    %15 = vector.load %arg6[%c0_12, %c0_13] : memref<128x128xf32, #tpu.memory_space<vmem>>, vector<128x128xf32>
    %cst_14 = arith.constant dense<0.000000e+00> : vector<256x128xf32>
    %16 = tpu.matmul %14, %15, %cst_14 {dimension_numbers = #tpu.dot_dimension_numbers<[1], [0], [0], [1], [0, 0, 1, 1], [], []>} : vector<256x128xf32>, vector<128x128xf32>, vector<256x128xf32> -> vector<256x128xf32>
    %c0_15 = arith.constant 0 : index
    %c0_16 = arith.constant 0 : index
    %17 = vector.load %arg7[%c0_15, %c0_16] : memref<1x128xf32, #tpu.memory_space<vmem>>, vector<1x128xf32>
    %18 = vector.broadcast %17 : vector<1x128xf32> to vector<256x128xf32>
    %19 = arith.addf %16, %18 : vector<256x128xf32>
    %c0_17 = arith.constant 0 : index
    %c0_18 = arith.constant 0 : index
    %20 = vector.load %arg8[%c0_17, %c0_18] : memref<256x128xf32, #tpu.memory_space<vmem>>, vector<256x128xf32>
    tpu.vector_store %arg8[%c0_17, %c0_18], %19 {strides = array<i32>} : memref<256x128xf32, #tpu.memory_space<vmem>>, vector<256x128xf32>,
    return
  }
  func.func @transform_0(%arg0: i32) -> (i32, i32) {
    %c0_i32 = arith.constant 0 : i32
    %c0_i32_0 = arith.constant 0 : i32
    return %arg0, %c0_i32 : i32, i32
  }
  func.func @transform_1(%arg0: i32) -> (i32, i32) {
    %c0_i32 = arith.constant 0 : i32
    %c0_i32_0 = arith.constant 0 : i32
    %c0_i32_1 = arith.constant 0 : i32
    return %c0_i32, %c0_i32_0 : i32, i32
  }
  func.func @transform_2(%arg0: i32) -> (i32, i32) {
    %c0_i32 = arith.constant 0 : i32
    %c0_i32_0 = arith.constant 0 : i32
    %c0_i32_1 = arith.constant 0 : i32
    return %c0_i32, %c0_i32_0 : i32, i32
  }
  func.func @transform_3(%arg0: i32) -> (i32, i32) {
    %c0_i32 = arith.constant 0 : i32
    %c0_i32_0 = arith.constant 0 : i32
    %c0_i32_1 = arith.constant 0 : i32
    return %c0_i32, %c0_i32_0 : i32, i32
  }
  func.func @transform_4(%arg0: i32) -> (i32, i32) {
    %c0_i32 = arith.constant 0 : i32
    %c0_i32_0 = arith.constant 0 : i32
    %c0_i32_1 = arith.constant 0 : i32
    return %c0_i32, %c0_i32_0 : i32, i32
  }
  func.func @transform_5(%arg0: i32) -> (i32, i32) {
    %c0_i32 = arith.constant 0 : i32
    %c0_i32_0 = arith.constant 0 : i32
    %c0_i32_1 = arith.constant 0 : i32
    return %c0_i32, %c0_i32_0 : i32, i32
  }
  func.func @transform_6(%arg0: i32) -> (i32, i32) {
    %c0_i32 = arith.constant 0 : i32
    %c0_i32_0 = arith.constant 0 : i32
    %c0_i32_1 = arith.constant 0 : i32
    return %c0_i32, %c0_i32_0 : i32, i32
  }
  func.func @transform_7(%arg0: i32) -> (i32, i32) {
    %c0_i32 = arith.constant 0 : i32
    %c0_i32_0 = arith.constant 0 : i32
    return %arg0, %c0_i32 : i32, i32
  }
}

</mosaic_0001>

<bundles_post_ra>
// kernel: tpu_custom_call.1
= control target key start
LH: loop header
LB: loop body
LE: loop exit
PB: predicated region body
PF: predicated region fallthrough
CT: control target
= control target key end

     0   :  { %12 = vsyncpa [#allocation3], 0  ;;  %s1830_s0 = inlined_call_operand.vmem [shape: f32[256,23], index: 0, kind: input, shape index: {}]   ;;  %s1831_s1 = inlined_call_operand.vmem [shape: f32[23,256], index: 1, kind: input, shape index: {}]   ;;  %s1832_s2 = inlined_call_operand.vmem [shape: f32[1,256], index: 2, kind: input, shape index: {}]   ;;  %s1833_s3 = inlined_call_operand.vmem [shape: f32[256,128], index: 3, kind: input, shape index: {}]   ;;  %s1834_s4 = inlined_call_operand.vmem [shape: f32[1,128], index: 4, kind: input, shape index: {}]   ;;  %s1835_s5 = inlined_call_operand.hbm [shape: f32[128,128], index: 5, kind: input, shape index: {}]   ;;  %s1836_s6 = inlined_call_operand.vmem [shape: f32[1,128], index: 6, kind: input, shape index: {}]   ;;  %s1837_s7 = inlined_call_operand.hbm [shape: f32[256,128], index: 7, kind: output, shape index: {}]  }
   0x1   :  { %13 = vsyncpa [#allocation4], 0  ;;  %s1322_s24 = smov [#allocation2]  }
   0x2   :  { %s29_s25 = sshll.u32 %s1322_s24, 4  ;;  %s30_s25 = int_to_ptr.vmem [resolvable:$true] %s29_s25 }
   0x3   :  { %s1286_s26 = scalar_lea.vmem %s30_s25, 2048  ;;  %p1291_p1 = scmp.lt.s32.totalorder %s30_s25, %s30_s25 }
   0x4   :  { %p1287_p0 = scmp.ne.s32.totalorder %s30_s25, %s1286_s26  ;;  %p1292_p2 = scmp.lt.s32.totalorder %s1286_s26, %s1286_s26 }
   0x6   :  { %p1293_p3 = por %p1292_p2, %p1291_p1 }
   0x8   :  { %p1294_p4 = pnand %p1293_p3, %p1287_p0 }
   0xa   :  { %1297 = shalt.err (!%p1294_p4)
}
   0xb   :  { %s1323_s27 = smov 128   ;;  %s1324_s28 = smov 8  }
   0xc   :  { %35 = dma.hbm_to_vmem [thread:$0]  %s1835_s5, 2048, %s30_s25, [#allocation3], %s1323_s27, %s1323_s27, %s1324_s28  }
   0xd   :  { %1318 = dma.done.wait [#allocation3], 2048  }
   0xe   :  { %1319 = vsyncadd [#allocation3], 4294965248  ;;  %v1325_v0 = vmov 0.0   ;;  %vm188_vm0 = vcmask 1046528   ;;  %v78_v1 = vld [vmem:[%s1831_s1 + $0x28] sm:$0x7f] }
   0xf   :  { %259 = vmatprep.mubr.f32.mxu0 %v1325_v0  ;;  %555 = vmatprep.subr.mxu1 %v1325_v0  ;;  %v77_v2 = vld [vmem:[%s1831_s1 + $0x20] sm:$0x7f]  ;;  %v76_v3 = vld [vmem:[%s1831_s1 + $0x18] sm:$0xff]  ;;  %v75_v4 = vld [vmem:[%s1831_s1 + $0x10] sm:$0xff]  ;;  %vm91_vm1 = vcmask 187392  }
  0x10   :  { %1109 = vmatprep.subr.msk.mxu0 %vm188_vm0, %v78_v1  ;;  %v74_v5 = vld [vmem:[%s1831_s1 + $0x8] sm:$0xff]  ;;  %v73_v6 = vld [vmem:[%s1831_s1] sm:$0xff]  ;;  %v43_v9 = vld [vmem:[%s1830_s0 + $0x10] sm:$0xff] }
  0x11   :  { %1110 = vmatpush1.msk.msra.mxu0 %vm188_vm0, %v77_v2  ;;  %v41_v7 = vld [vmem:[%s1830_s0] sm:$0xff]  ;;  %v42_v8 = vld [vmem:[%s1830_s0 + $0x8] sm:$0xff]  ;;  %v531_v10 = vld [vmem:[%s1833_s3 + $0x78] sm:$0xff] }
  0x12   :  { %223 = vmatprep.subr.mxu0 %v76_v3  ;;  %556 = vmatpush1.msra.mxu1 %v531_v10  ;;  %v530_v11 = vld [vmem:[%s1833_s3 + $0x70] sm:$0xff]  ;;  %v529_v12 = vld [vmem:[%s1833_s3 + $0x68] sm:$0xff]  ;;  %v44_v13 = vld [vmem:[%s1830_s0 + $0x18] sm:$0xff] }
  0x13   :  { %224 = vmatpush1.msra.mxu0 %v75_v4  ;;  %557 = vmatprep.subr.mxu1 %v1325_v0  ;;  %v528_v14 = vld [vmem:[%s1833_s3 + $0x60] sm:$0xff]  ;;  %v527_v15 = vld [vmem:[%s1833_s3 + $0x58] sm:$0xff]  ;;  %v526_v17 = vld [vmem:[%s1833_s3 + $0x50] sm:$0xff] }
  0x14   :  { %225 = vmatprep.subr.mxu0 %v74_v5  ;;  %558 = vmatpush1.msra.mxu1 %v530_v11  ;;  %v45_v16 = vld [vmem:[%s1830_s0 + $0x20] sm:$0xff]  ;;  %v525_v18 = vld [vmem:[%s1833_s3 + $0x48] sm:$0xff]  ;;  %v523_v21 = vld [vmem:[%s1833_s3 + $0x38] sm:$0xff] }
  0x15   :  { %226 = vmatpush1.msra.mxu0 %v73_v6  ;;  %559 = vmatprep.subr.mxu1 %v1325_v0  ;;  %v46_v19 = vld [vmem:[%s1830_s0 + $0x28] sm:$0xff]  ;;  %v524_v20 = vld [vmem:[%s1833_s3 + $0x40] sm:$0xff]  ;;  %v47_v22 = vld [vmem:[%s1830_s0 + $0x30] sm:$0xff] }
  0x16   :  { %1111 = vmatmul.mubr.msk.f32.vlgmr.msra.gmra.mxu0 %vm91_vm1, %v41_v7  ;;  %560 = vmatpush1.msra.mxu1 %v529_v12  ;;  %v522_v23 = vld [vmem:[%s1833_s3 + $0x30] sm:$0xff]  ;;  %v521_v24 = vld [vmem:[%s1833_s3 + $0x28] sm:$0xff]  ;;  %v48_v25 = vld [vmem:[%s1830_s0 + $0x38] sm:$0xff] }
  0x17   :  { %265 = vmatprep.mubr.f32.mxu0 %v1325_v0  ;;  %561 = vmatprep.subr.mxu1 %v1325_v0  ;;  %v520_v26 = vld [vmem:[%s1833_s3 + $0x20] sm:$0xff]  ;;  %v519_v27 = vld [vmem:[%s1833_s3 + $0x18] sm:$0xff]  ;;  %v518_v29 = vld [vmem:[%s1833_s3 + $0x10] sm:$0xff] }
  0x18   :  { %562 = vmatpush1.msra.mxu1 %v528_v14  ;;  %v49_v28 = vld [vmem:[%s1830_s0 + $0x40] sm:$0xff]  ;;  %v517_v30 = vld [vmem:[%s1833_s3 + $0x8] sm:$0xff]  ;;  %v547_v33 = vld [vmem:[%s1833_s3 + $0xf8] sm:$0xff] }
  0x19   :  { %563 = vmatprep.subr.mxu1 %v1325_v0  ;;  %v50_v31 = vld [vmem:[%s1830_s0 + $0x48] sm:$0xff]  ;;  %v516_v32 = vld [vmem:[%s1833_s3] sm:$0xff]  ;;  %v51_v34 = vld [vmem:[%s1830_s0 + $0x50] sm:$0xff] }
  0x1a   :  { %1112 = vmatmul.mubr.msk.f32.gmra.mxu0 %vm91_vm1, %v42_v8  ;;  %564 = vmatpush1.msra.mxu1 %v527_v15  ;;  %v546_v35 = vld [vmem:[%s1833_s3 + $0xf0] sm:$0xff]  ;;  %v545_v36 = vld [vmem:[%s1833_s3 + $0xe8] sm:$0xff]  ;;  %v52_v37 = vld [vmem:[%s1830_s0 + $0x58] sm:$0xff]  ;;  %v81_v8 = vlaneseq }
  0x1b   :  { %271 = vmatprep.mubr.f32.mxu0 %v1325_v0  ;;  %565 = vmatprep.subr.mxu1 %v1325_v0  ;;  %v544_v38 = vld [vmem:[%s1833_s3 + $0xe0] sm:$0xff]  ;;  %v543_v39 = vld [vmem:[%s1833_s3 + $0xd8] sm:$0xff]  ;;  %v542_v41 = vld [vmem:[%s1833_s3 + $0xd0] sm:$0xff] }
  0x1c   :  { %566 = vmatpush1.msra.mxu1 %v526_v17  ;;  %v53_v40 = vld [vmem:[%s1830_s0 + $0x60] sm:$0xff]  ;;  %v541_v42 = vld [vmem:[%s1833_s3 + $0xc8] sm:$0xff]  ;;  %v539_v45 = vld [vmem:[%s1833_s3 + $0xb8] sm:$0xff] }
  0x1d   :  { %567 = vmatprep.subr.mxu1 %v1325_v0  ;;  %v54_v43 = vld [vmem:[%s1830_s0 + $0x68] sm:$0xff]  ;;  %v540_v44 = vld [vmem:[%s1833_s3 + $0xc0] sm:$0xff]  ;;  %v55_v46 = vld [vmem:[%s1830_s0 + $0x70] sm:$0xff] }
  0x1e   :  { %1113 = vmatmul.mubr.msk.f32.gmra.mxu0 %vm91_vm1, %v43_v9  ;;  %568 = vmatpush1.msra.mxu1 %v525_v18  ;;  %v538_v47 = vld [vmem:[%s1833_s3 + $0xb0] sm:$0xff]  ;;  %v537_v48 = vld [vmem:[%s1833_s3 + $0xa8] sm:$0xff]  ;;  %v56_v49 = vld [vmem:[%s1830_s0 + $0x78] sm:$0xff]  ;;  %v82_v9 = vshrl.u32 %v81_v8, 7 }
  0x1f   :  { %277 = vmatprep.mubr.f32.mxu0 %v1325_v0  ;;  %569 = vmatprep.subr.mxu1 %v1325_v0  ;;  %v536_v50 = vld [vmem:[%s1833_s3 + $0xa0] sm:$0xff]  ;;  %v535_v52 = vld [vmem:[%s1833_s3 + $0x98] sm:$0xff]  ;;  %v58_v53 = vld [vmem:[%s1830_s0 + $0x88] sm:$0xff] }
  0x20   :  { %570 = vmatpush1.msra.mxu1 %v524_v20  ;;  %v57_v51 = vld [vmem:[%s1830_s0 + $0x80] sm:$0xff]  ;;  %v534_v54 = vld [vmem:[%s1833_s3 + $0x90] sm:$0xff]  ;;  %v533_v55 = vld [vmem:[%s1833_s3 + $0x88] sm:$0xff]  ;;  %v83_v10 = vsub.s32 0, %v82_v9  ;;  %v87_v12 = vsub.s32 1, %v82_v9 }
  0x21   :  { %571 = vmatprep.subr.mxu1 %v1325_v0  ;;  %v59_v56 = vld [vmem:[%s1830_s0 + $0x90] sm:$0xff]  ;;  %v532_v57 = vld [vmem:[%s1833_s3 + $0x80] sm:$0xff]  ;;  %v60_v58 = vld [vmem:[%s1830_s0 + $0x98] sm:$0xff] }
  0x22   :  { %1114 = vmatmul.mubr.msk.f32.gmra.mxu0 %vm91_vm1, %v44_v13  ;;  %572 = vmatpush1.msra.mxu1 %v523_v21  ;;  %v61_v59 = vld [vmem:[%s1830_s0 + $0xa0] sm:$0xff]  ;;  %v62_v60 = vld [vmem:[%s1830_s0 + $0xa8] sm:$0xff]  ;;  %v63_v61 = vld [vmem:[%s1830_s0 + $0xb0] sm:$0xff] }
  0x23   :  { %283 = vmatprep.mubr.f32.mxu0 %v1325_v0  ;;  %573 = vmatprep.subr.mxu1 %v1325_v0  ;;  %v64_v62 = vld [vmem:[%s1830_s0 + $0xb8] sm:$0xff]  ;;  %v65_v63 = vld [vmem:[%s1830_s0 + $0xc0] sm:$0xff]  ;;  %v66_v1 = vld [vmem:[%s1830_s0 + $0xc8] sm:$0xff] }
  0x24   :  { %574 = vmatpush1.msra.mxu1 %v522_v23  ;;  %v67_v2 = vld [vmem:[%s1830_s0 + $0xd0] sm:$0xff]  ;;  %v68_v3 = vld [vmem:[%s1830_s0 + $0xd8] sm:$0xff]  ;;  %v69_v4 = vld [vmem:[%s1830_s0 + $0xe0] sm:$0xff] }
  0x25   :  { %575 = vmatprep.subr.mxu1 %v1325_v0  ;;  %v70_v5 = vld [vmem:[%s1830_s0 + $0xe8] sm:$0xff]  ;;  %v71_v6 = vld [vmem:[%s1830_s0 + $0xf0] sm:$0xff]  ;;  %v72_v7 = vld [vmem:[%s1830_s0 + $0xf8] sm:$0xff] }
  0x26   :  { %1115 = vmatmul.mubr.msk.f32.gmra.mxu0 %vm91_vm1, %v45_v16  ;;  %576 = vmatpush1.msra.mxu1 %v521_v24  ;;  %v79_v11 = vld [vmem:[%s1832_s2] sm:$0x3]  ;;  %v826_v20 = vld [vmem:[#allocation2 + $0x70] sm:$0xff] }
  0x27   :  { %289 = vmatprep.mubr.f32.mxu0 %v1325_v0  ;;  %577 = vmatprep.subr.mxu1 %v1325_v0  ;;  %v1682_v13 = vrot.slane %v79_v11, %v83_v10  ;;  %v1684_v14 = vrot.slane %v79_v11, %v87_v12 }
  0x28   :  { %578 = vmatpush1.msra.mxu1 %v520_v26 }
  0x29   :  { %579 = vmatprep.subr.mxu1 %v1325_v0 }
  0x2a   :  { %1116 = vmatmul.mubr.msk.f32.gmra.mxu0 %vm91_vm1, %v46_v19  ;;  %580 = vmatpush1.msra.mxu1 %v519_v27  ;;  %v827_v19 = vld [vmem:[#allocation2 + $0x78] sm:$0xff] }
  0x2b   :  { %295 = vmatprep.mubr.f32.mxu0 %v1325_v0  ;;  %581 = vmatprep.subr.mxu1 %v1325_v0 }
  0x2c   :  { %582 = vmatpush1.msra.mxu1 %v518_v29  ;;  %1193 = vmatprep.subr.mxu0 %v827_v19 }
  0x2d   :  { %583 = vmatprep.subr.mxu1 %v1325_v0  ;;  %1194 = vmatpush3.msra.mxu0 %v827_v19 }
  0x2e   :  { %1117 = vmatmul.mubr.msk.f32.gmra.mxu0 %vm91_vm1, %v47_v22  ;;  %584 = vmatpush1.msra.mxu1 %v517_v30 }
  0x2f   :  { %301 = vmatprep.mubr.f32.mxu0 %v1325_v0  ;;  %585 = vmatprep.subr.mxu1 %v1325_v0 }
  0x30   :  { %586 = vmatpush1.msra.mxu1 %v516_v32  ;;  %1195 = vmatprep.subr.mxu0 %v826_v20 }
  0x31   :  { %587 = vmatprep.subr.mxu1 %v1325_v0  ;;  %1196 = vmatpush3.msra.mxu0 %v826_v20 }
  0x32   :  { %1118 = vmatmul.mubr.msk.f32.gmra.mxu0 %vm91_vm1, %v48_v25  ;;  %588 = vmatpush2.msra.mxu1 %v547_v33  ;;  %v825_v25 = vld [vmem:[#allocation2 + $0x68] sm:$0xff]  ;;  %v823_v33 = vld [vmem:[#allocation2 + $0x58] sm:$0xff] }
  0x33   :  { %307 = vmatprep.mubr.f32.mxu0 %v1325_v0  ;;  %589 = vmatprep.subr.mxu1 %v1325_v0 }
  0x34   :  { %590 = vmatpush2.msra.mxu1 %v546_v35  ;;  %1197 = vmatprep.subr.mxu0 %v825_v25 }
  0x35   :  { %591 = vmatprep.subr.mxu1 %v1325_v0  ;;  %1198 = vmatpush3.msra.mxu0 %v825_v25 }
  0x36   :  { %1119 = vmatmul.mubr.msk.f32.gmra.mxu0 %vm91_vm1, %v49_v28  ;;  %592 = vmatpush2.msra.mxu1 %v545_v36  ;;  %v824_v28 = vld [vmem:[#allocation2 + $0x60] sm:$0xff]  ;;  %v822_v36 = vld [vmem:[#allocation2 + $0x50] sm:$0xff] }
  0x37   :  { %313 = vmatprep.mubr.f32.mxu0 %v1325_v0  ;;  %593 = vmatprep.subr.mxu1 %v1325_v0 }
  0x38   :  { %594 = vmatpush2.msra.mxu1 %v544_v38  ;;  %1199 = vmatprep.subr.mxu0 %v824_v28 }
  0x39   :  { %595 = vmatprep.subr.mxu1 %v1325_v0  ;;  %1200 = vmatpush3.msra.mxu0 %v824_v28 }
  0x3a   :  { %1120 = vmatmul.mubr.msk.f32.gmra.mxu0 %vm91_vm1, %v50_v31  ;;  %596 = vmatpush2.msra.mxu1 %v543_v39 }
  0x3b   :  { %319 = vmatprep.mubr.f32.mxu0 %v1325_v0  ;;  %597 = vmatprep.subr.mxu1 %v1325_v0 }
  0x3c   :  { %598 = vmatpush2.msra.mxu1 %v542_v41  ;;  %1201 = vmatprep.subr.mxu0 %v823_v33  ;;  %v821_v41 = vld [vmem:[#allocation2 + $0x48] sm:$0xff] }
  0x3d   :  { %599 = vmatprep.subr.mxu1 %v1325_v0  ;;  %1202 = vmatpush3.msra.mxu0 %v823_v33 }
  0x3e   :  { %1121 = vmatmul.mubr.msk.f32.gmra.mxu0 %vm91_vm1, %v51_v34  ;;  %600 = vmatpush2.msra.mxu1 %v541_v42 }
  0x3f   :  { %325 = vmatprep.mubr.f32.mxu0 %v1325_v0  ;;  %601 = vmatprep.subr.mxu1 %v1325_v0 }
  0x40   :  { %602 = vmatpush2.msra.mxu1 %v540_v44  ;;  %1203 = vmatprep.subr.mxu0 %v822_v36  ;;  %v820_v44 = vld [vmem:[#allocation2 + $0x40] sm:$0xff] }
  0x41   :  { %603 = vmatprep.subr.mxu1 %v1325_v0  ;;  %1204 = vmatpush3.msra.mxu0 %v822_v36 }
  0x42   :  { %1122 = vmatmul.mubr.msk.f32.gmra.mxu0 %vm91_vm1, %v52_v37  ;;  %604 = vmatpush2.msra.mxu1 %v539_v45 }
  0x43   :  { %331 = vmatprep.mubr.f32.mxu0 %v1325_v0  ;;  %605 = vmatprep.subr.mxu1 %v1325_v0 }
  0x44   :  { %606 = vmatpush2.msra.mxu1 %v538_v47  ;;  %1205 = vmatprep.subr.mxu0 %v821_v41 }
  0x45   :  { %607 = vmatprep.subr.mxu1 %v1325_v0  ;;  %1206 = vmatpush3.msra.mxu0 %v821_v41 }
  0x46   :  { %1123 = vmatmul.mubr.msk.f32.gmra.mxu0 %vm91_vm1, %v53_v40  ;;  %608 = vmatpush2.msra.mxu1 %v537_v48 }
  0x47   :  { %337 = vmatprep.mubr.f32.mxu0 %v1325_v0  ;;  %609 = vmatprep.subr.mxu1 %v1325_v0 }
  0x48   :  { %610 = vmatpush2.msra.mxu1 %v536_v50  ;;  %1207 = vmatprep.subr.mxu0 %v820_v44 }
  0x49   :  { %611 = vmatprep.subr.mxu1 %v1325_v0  ;;  %1208 = vmatpush3.msra.mxu0 %v820_v44 }
  0x4a   :  { %1124 = vmatmul.mubr.msk.f32.gmra.mxu0 %vm91_vm1, %v54_v43  ;;  %612 = vmatpush2.msra.mxu1 %v535_v52  ;;  %v818_v52 = vld [vmem:[#allocation2 + $0x30] sm:$0xff] }
  0x4b   :  { %343 = vmatprep.mubr.f32.mxu0 %v1325_v0  ;;  %613 = vmatprep.subr.mxu1 %v1325_v0 }
  0x4c   :  { %614 = vmatpush2.msra.mxu1 %v534_v54 }
  0x4d   :  { %615 = vmatprep.subr.mxu1 %v1325_v0 }
  0x4e   :  { %1125 = vmatmul.mubr.msk.f32.gmra.mxu0 %vm91_vm1, %v55_v46  ;;  %616 = vmatpush2.msra.mxu1 %v533_v55 }
  0x4f   :  { %349 = vmatprep.mubr.f32.mxu0 %v1325_v0  ;;  %617 = vmatprep.subr.mxu1 %v1325_v0 }
  0x50   :  { %618 = vmatpush2.msra.mxu1 %v532_v57  ;;  %v817_v57 = vld [vmem:[#allocation2 + $0x28] sm:$0xff] }
  0x52   :  { %1126 = vmatmul.mubr.msk.f32.gmra.mxu0 %vm91_vm1, %v56_v49  ;;  %v819_v49 = vld [vmem:[#allocation2 + $0x38] sm:$0xff] }
  0x53   :  { %355 = vmatprep.mubr.f32.mxu0 %v1325_v0  ;;  %1209 = vmatprep.subr.mxu0 %v819_v49 }
  0x54   :  { %1210 = vmatpush3.msra.mxu0 %v819_v49 }
  0x55   :  { %1211 = vmatprep.subr.mxu0 %v818_v52 }
  0x56   :  { %1127 = vmatmul.mubr.msk.f32.gmra.mxu0 %vm91_vm1, %v57_v51 }
  0x57   :  { %361 = vmatprep.mubr.f32.mxu0 %v1325_v0  ;;  %1212 = vmatpush3.msra.mxu0 %v818_v52 }
  0x58   :  { %1213 = vmatprep.subr.mxu0 %v817_v57 }
  0x59   :  { %1214 = vmatpush3.msra.mxu0 %v817_v57 }
  0x5a   :  { %1128 = vmatmul.mubr.msk.f32.gmra.mxu0 %vm91_vm1, %v58_v53 }
  0x5b   :  { %367 = vmatprep.mubr.f32.mxu0 %v1325_v0 }
  0x5e   :  { %1129 = vmatmul.mubr.msk.f32.gmra.mxu0 %vm91_vm1, %v59_v56 }
  0x5f   :  { %373 = vmatprep.mubr.f32.mxu0 %v1325_v0 }
  0x62   :  { %1130 = vmatmul.mubr.msk.f32.gmra.mxu0 %vm91_vm1, %v60_v58 }
  0x63   :  { %379 = vmatprep.mubr.f32.mxu0 %v1325_v0 }
  0x66   :  { %1131 = vmatmul.mubr.msk.f32.gmra.mxu0 %vm91_vm1, %v61_v59 }
  0x67   :  { %385 = vmatprep.mubr.f32.mxu0 %v1325_v0 }
  0x6a   :  { %1132 = vmatmul.mubr.msk.f32.gmra.mxu0 %vm91_vm1, %v62_v60  ;;  %v816_v60 = vld [vmem:[#allocation2 + $0x20] sm:$0xff] }
  0x6b   :  { %391 = vmatprep.mubr.f32.mxu0 %v1325_v0  ;;  %1215 = vmatprep.subr.mxu0 %v816_v60 }
  0x6c   :  { %1216 = vmatpush3.msra.mxu0 %v816_v60 }
  0x6e   :  { %1133 = vmatmul.mubr.msk.f32.gmra.mxu0 %vm91_vm1, %v63_v61 }
  0x6f   :  { %397 = vmatprep.mubr.f32.mxu0 %v1325_v0 }
  0x72   :  { %1134 = vmatmul.mubr.msk.f32.gmra.mxu0 %vm91_vm1, %v64_v62 }
  0x73   :  { %403 = vmatprep.mubr.f32.mxu0 %v1325_v0 }
  0x76   :  { %1135 = vmatmul.mubr.msk.f32.gmra.mxu0 %vm91_vm1, %v65_v63 }
  0x77   :  { %409 = vmatprep.mubr.f32.mxu0 %v1325_v0 }
  0x7a   :  { %1136 = vmatmul.mubr.msk.f32.gmra.mxu0 %vm91_vm1, %v66_v1 }
  0x7b   :  { %415 = vmatprep.mubr.f32.mxu0 %v1325_v0 }
  0x7e   :  { %1137 = vmatmul.mubr.msk.f32.gmra.mxu0 %vm91_vm1, %v67_v2 }
  0x7f   :  { %421 = vmatprep.mubr.f32.mxu0 %v1325_v0 }
  0x82   :  { %1138 = vmatmul.mubr.msk.f32.gmra.mxu0 %vm91_vm1, %v68_v3 }
  0x83   :  { %427 = vmatprep.mubr.f32.mxu0 %v1325_v0 }
  0x86   :  { %1139 = vmatmul.mubr.msk.f32.gmra.mxu0 %vm91_vm1, %v69_v4 }
  0x87   :  { %433 = vmatprep.mubr.f32.mxu0 %v1325_v0 }
  0x8a   :  { %1140 = vmatmul.mubr.msk.f32.gmra.mxu0 %vm91_vm1, %v70_v5 }
  0x8b   :  { %439 = vmatprep.mubr.f32.mxu0 %v1325_v0 }
  0x8e   :  { %1141 = vmatmul.mubr.msk.f32.gmra.mxu0 %vm91_vm1, %v71_v6 }
  0x8f   :  { %445 = vmatprep.mubr.f32.mxu0 %v1325_v0 }
  0x92   :  { %1142 = vmatmul.mubr.msk.f32.gmra.mxu0 %vm91_vm1, %v72_v7 }
  0xd6   :  { %v261_v15 = vpop.f32.mrf.mxu0 }
  0xd7   :  { %v262_v0 = vadd.f32 %v261_v15, %v1682_v13 }
  0xd8   :  { %v263_v16 = vpop.f32.mrf.mxu0 }
  0xd9   :  { %v264_v17 = vadd.f32 %v263_v16, %v1684_v14  ;;  %v452_v22 = vmax.f32 %v262_v0, 0.0 }
  0xda   :  { %v267_v18 = vpop.f32.mrf.mxu0 }
  0xdb   :  { %v453_v21 = vmax.f32 %v264_v17, 0.0  ;;  %v268_v23 = vadd.f32 %v267_v18, %v1682_v13 }
  0xdc   :  { %v269_v24 = vpop.f32.mrf.mxu0 }
  0xdd   :  { %v270_v26 = vadd.f32 %v269_v24, %v1684_v14  ;;  %619 = vmatprep.mubr.f32.mxu1 %v453_v21  ;;  %v454_v30 = vmax.f32 %v268_v23, 0.0 }
  0xde   :  { %v273_v27 = vpop.f32.mrf.mxu0  ;;  %620 = vmatmul.mubr.f32.vlgmr.msra.gmra.mxu1 %v452_v22 }
  0xdf   :  { %v455_v29 = vmax.f32 %v270_v26, 0.0  ;;  %v274_v31 = vadd.f32 %v273_v27, %v1682_v13 }
  0xe0   :  { %v275_v32 = vpop.f32.mrf.mxu0 }
  0xe1   :  { %v276_v34 = vadd.f32 %v275_v32, %v1684_v14  ;;  %624 = vmatprep.mubr.f32.mxu1 %v455_v29  ;;  %v456_v38 = vmax.f32 %v274_v31, 0.0 }
  0xe2   :  { %v279_v35 = vpop.f32.mrf.mxu0  ;;  %625 = vmatmul.mubr.f32.gmra.mxu1 %v454_v30 }
  0xe3   :  { %v457_v37 = vmax.f32 %v276_v34, 0.0  ;;  %v280_v39 = vadd.f32 %v279_v35, %v1682_v13 }
  0xe4   :  { %v281_v40 = vpop.f32.mrf.mxu0 }
  0xe5   :  { %v282_v42 = vadd.f32 %v281_v40, %v1684_v14  ;;  %629 = vmatprep.mubr.f32.mxu1 %v457_v37  ;;  %v458_v46 = vmax.f32 %v280_v39, 0.0 }
  0xe6   :  { %v285_v43 = vpop.f32.mrf.mxu0  ;;  %630 = vmatmul.mubr.f32.gmra.mxu1 %v456_v38 }
  0xe7   :  { %v459_v45 = vmax.f32 %v282_v42, 0.0  ;;  %v286_v47 = vadd.f32 %v285_v43, %v1682_v13 }
  0xe8   :  { %v287_v48 = vpop.f32.mrf.mxu0 }
  0xe9   :  { %v288_v50 = vadd.f32 %v287_v48, %v1684_v14  ;;  %634 = vmatprep.mubr.f32.mxu1 %v459_v45  ;;  %v460_v54 = vmax.f32 %v286_v47, 0.0 }
  0xea   :  { %v291_v51 = vpop.f32.mrf.mxu0  ;;  %635 = vmatmul.mubr.f32.gmra.mxu1 %v458_v46 }
  0xeb   :  { %v461_v53 = vmax.f32 %v288_v50, 0.0  ;;  %v292_v55 = vadd.f32 %v291_v51, %v1682_v13 }
  0xec   :  { %v293_v56 = vpop.f32.mrf.mxu0 }
  0xed   :  { %v294_v58 = vadd.f32 %v293_v56, %v1684_v14  ;;  %639 = vmatprep.mubr.f32.mxu1 %v461_v53  ;;  %v462_v62 = vmax.f32 %v292_v55, 0.0 }
  0xee   :  { %v297_v59 = vpop.f32.mrf.mxu0  ;;  %640 = vmatmul.mubr.f32.gmra.mxu1 %v460_v54 }
  0xef   :  { %v463_v61 = vmax.f32 %v294_v58, 0.0  ;;  %v298_v63 = vadd.f32 %v297_v59, %v1682_v13 }
  0xf0   :  { %v299_v1 = vpop.f32.mrf.mxu0 }
  0xf1   :  { %v300_v2 = vadd.f32 %v299_v1, %v1684_v14  ;;  %644 = vmatprep.mubr.f32.mxu1 %v463_v61  ;;  %v464_v5 = vmax.f32 %v298_v63, 0.0 }
  0xf2   :  { %v303_v3 = vpop.f32.mrf.mxu0  ;;  %645 = vmatmul.mubr.f32.gmra.mxu1 %v462_v62 }
  0xf3   :  { %v465_v4 = vmax.f32 %v300_v2, 0.0  ;;  %v304_v6 = vadd.f32 %v303_v3, %v1682_v13 }
  0xf4   :  { %v305_v7 = vpop.f32.mrf.mxu0 }
  0xf5   :  { %v306_v8 = vadd.f32 %v305_v7, %v1684_v14  ;;  %649 = vmatprep.mubr.f32.mxu1 %v465_v4  ;;  %v466_v11 = vmax.f32 %v304_v6, 0.0 }
  0xf6   :  { %v309_v9 = vpop.f32.mrf.mxu0  ;;  %650 = vmatmul.mubr.f32.gmra.mxu1 %v464_v5 }
  0xf7   :  { %v467_v10 = vmax.f32 %v306_v8, 0.0  ;;  %v310_v12 = vadd.f32 %v309_v9, %v1682_v13  ;;  %v815_v8 = vld [vmem:[#allocation2 + $0x18] sm:$0xff] }
  0xf8   :  { %v311_v15 = vpop.f32.mrf.mxu0  ;;  %1217 = vmatprep.subr.mxu0 %v815_v8 }
  0xf9   :  { %v312_v0 = vadd.f32 %v311_v15, %v1684_v14  ;;  %654 = vmatprep.mubr.f32.mxu1 %v467_v10  ;;  %v468_v18 = vmax.f32 %v310_v12, 0.0  ;;  %1218 = vmatpush3.msra.mxu0 %v815_v8  ;;  %v814_v15 = vld [vmem:[#allocation2 + $0x10] sm:$0xff] }
  0xfa   :  { %v315_v16 = vpop.f32.mrf.mxu0  ;;  %655 = vmatmul.mubr.f32.gmra.mxu1 %v466_v11  ;;  %1219 = vmatprep.subr.mxu0 %v814_v15 }
  0xfb   :  { %v469_v17 = vmax.f32 %v312_v0, 0.0  ;;  %v316_v19 = vadd.f32 %v315_v16, %v1682_v13  ;;  %1220 = vmatpush3.msra.mxu0 %v814_v15 }
  0xfc   :  { %v317_v20 = vpop.f32.mrf.mxu0 }
  0xfd   :  { %v318_v21 = vadd.f32 %v317_v20, %v1684_v14  ;;  %659 = vmatprep.mubr.f32.mxu1 %v469_v17  ;;  %v470_v24 = vmax.f32 %v316_v19, 0.0  ;;  %v813_v17 = vld [vmem:[#allocation2 + $0x8] sm:$0xff] }
  0xfe   :  { %v321_v22 = vpop.f32.mrf.mxu0  ;;  %660 = vmatmul.mubr.f32.gmra.mxu1 %v468_v18  ;;  %1221 = vmatprep.subr.mxu0 %v813_v17 }
  0xff   :  { %v471_v23 = vmax.f32 %v318_v21, 0.0  ;;  %v322_v25 = vadd.f32 %v321_v22, %v1682_v13  ;;  %1222 = vmatpush3.msra.mxu0 %v813_v17  ;;  %v812_v22 = vld [vmem:[#allocation2] sm:$0xff] }
 0x100   :  { %v323_v26 = vpop.f32.mrf.mxu0  ;;  %1223 = vmatprep.subr.mxu0 %v812_v22 }
 0x101   :  { %v324_v27 = vadd.f32 %v323_v26, %v1684_v14  ;;  %664 = vmatprep.mubr.f32.mxu1 %v471_v23  ;;  %v472_v30 = vmax.f32 %v322_v25, 0.0  ;;  %1224 = vmatpush3.msra.mxu0 %v812_v22 }
 0x102   :  { %v327_v28 = vpop.f32.mrf.mxu0  ;;  %665 = vmatmul.mubr.f32.gmra.mxu1 %v470_v24 }
 0x103   :  { %v473_v29 = vmax.f32 %v324_v27, 0.0  ;;  %v328_v31 = vadd.f32 %v327_v28, %v1682_v13 }
 0x104   :  { %v329_v32 = vpop.f32.mrf.mxu0 }
 0x105   :  { %v330_v33 = vadd.f32 %v329_v32, %v1684_v14  ;;  %669 = vmatprep.mubr.f32.mxu1 %v473_v29  ;;  %v474_v36 = vmax.f32 %v328_v31, 0.0 }
 0x106   :  { %v333_v34 = vpop.f32.mrf.mxu0  ;;  %670 = vmatmul.mubr.f32.gmra.mxu1 %v472_v30 }
 0x107   :  { %v475_v35 = vmax.f32 %v330_v33, 0.0  ;;  %v334_v37 = vadd.f32 %v333_v34, %v1682_v13 }
 0x108   :  { %v335_v38 = vpop.f32.mrf.mxu0 }
 0x109   :  { %v336_v39 = vadd.f32 %v335_v38, %v1684_v14  ;;  %674 = vmatprep.mubr.f32.mxu1 %v475_v35  ;;  %v476_v42 = vmax.f32 %v334_v37, 0.0 }
 0x10a   :  { %v339_v40 = vpop.f32.mrf.mxu0  ;;  %675 = vmatmul.mubr.f32.gmra.mxu1 %v474_v36 }
 0x10b   :  { %v477_v41 = vmax.f32 %v336_v39, 0.0  ;;  %v340_v43 = vadd.f32 %v339_v40, %v1682_v13 }
 0x10c   :  { %v341_v44 = vpop.f32.mrf.mxu0 }
 0x10d   :  { %v342_v45 = vadd.f32 %v341_v44, %v1684_v14  ;;  %679 = vmatprep.mubr.f32.mxu1 %v477_v41  ;;  %v478_v48 = vmax.f32 %v340_v43, 0.0 }
 0x10e   :  { %v345_v46 = vpop.f32.mrf.mxu0  ;;  %680 = vmatmul.mubr.f32.gmra.mxu1 %v476_v42 }
 0x10f   :  { %v479_v47 = vmax.f32 %v342_v45, 0.0  ;;  %v346_v49 = vadd.f32 %v345_v46, %v1682_v13 }
 0x110   :  { %v347_v50 = vpop.f32.mrf.mxu0 }
 0x111   :  { %v348_v51 = vadd.f32 %v347_v50, %v1684_v14  ;;  %684 = vmatprep.mubr.f32.mxu1 %v479_v47  ;;  %v480_v54 = vmax.f32 %v346_v49, 0.0 }
 0x112   :  { %v351_v52 = vpop.f32.mrf.mxu0  ;;  %685 = vmatmul.mubr.f32.gmra.mxu1 %v478_v48 }
 0x113   :  { %v481_v53 = vmax.f32 %v348_v51, 0.0  ;;  %v352_v55 = vadd.f32 %v351_v52, %v1682_v13 }
 0x114   :  { %v353_v56 = vpop.f32.mrf.mxu0 }
 0x115   :  { %v354_v57 = vadd.f32 %v353_v56, %v1684_v14  ;;  %689 = vmatprep.mubr.f32.mxu1 %v481_v53  ;;  %v482_v60 = vmax.f32 %v352_v55, 0.0 }
 0x116   :  { %v357_v58 = vpop.f32.mrf.mxu0  ;;  %690 = vmatmul.mubr.f32.gmra.mxu1 %v480_v54 }
 0x117   :  { %v483_v59 = vmax.f32 %v354_v57, 0.0  ;;  %v358_v61 = vadd.f32 %v357_v58, %v1682_v13 }
 0x118   :  { %v359_v62 = vpop.f32.mrf.mxu0 }
 0x119   :  { %v360_v63 = vadd.f32 %v359_v62, %v1684_v14  ;;  %694 = vmatprep.mubr.f32.mxu1 %v483_v59  ;;  %v484_v3 = vmax.f32 %v358_v61, 0.0 }
 0x11a   :  { %v363_v1 = vpop.f32.mrf.mxu0  ;;  %695 = vmatmul.mubr.f32.gmra.mxu1 %v482_v60 }
 0x11b   :  { %v485_v2 = vmax.f32 %v360_v63, 0.0  ;;  %v364_v4 = vadd.f32 %v363_v1, %v1682_v13 }
 0x11c   :  { %v365_v5 = vpop.f32.mrf.mxu0 }
 0x11d   :  { %v366_v6 = vadd.f32 %v365_v5, %v1684_v14  ;;  %699 = vmatprep.mubr.f32.mxu1 %v485_v2  ;;  %v486_v10 = vmax.f32 %v364_v4, 0.0 }
 0x11e   :  { %v369_v7 = vpop.f32.mrf.mxu0  ;;  %700 = vmatmul.mubr.f32.gmra.mxu1 %v484_v3 }
 0x11f   :  { %v487_v9 = vmax.f32 %v366_v6, 0.0  ;;  %v370_v11 = vadd.f32 %v369_v7, %v1682_v13 }
 0x120   :  { %v371_v12 = vpop.f32.mrf.mxu0 }
 0x121   :  { %v372_v0 = vadd.f32 %v371_v12, %v1684_v14  ;;  %704 = vmatprep.mubr.f32.mxu1 %v487_v9  ;;  %v488_v19 = vmax.f32 %v370_v11, 0.0 }
 0x122   :  { %v375_v16 = vpop.f32.mrf.mxu0  ;;  %705 = vmatmul.mubr.f32.gmra.mxu1 %v486_v10 }
 0x123   :  { %v489_v18 = vmax.f32 %v372_v0, 0.0  ;;  %v376_v20 = vadd.f32 %v375_v16, %v1682_v13 }
 0x124   :  { %v377_v21 = vpop.f32.mrf.mxu0 }
 0x125   :  { %v378_v23 = vadd.f32 %v377_v21, %v1684_v14  ;;  %709 = vmatprep.mubr.f32.mxu1 %v489_v18  ;;  %v490_v26 = vmax.f32 %v376_v20, 0.0 }
 0x126   :  { %v381_v24 = vpop.f32.mrf.mxu0  ;;  %710 = vmatmul.mubr.f32.gmra.mxu1 %v488_v19 }
 0x127   :  { %v491_v25 = vmax.f32 %v378_v23, 0.0  ;;  %v382_v27 = vadd.f32 %v381_v24, %v1682_v13 }
 0x128   :  { %v383_v28 = vpop.f32.mrf.mxu0 }
 0x129   :  { %v384_v29 = vadd.f32 %v383_v28, %v1684_v14  ;;  %714 = vmatprep.mubr.f32.mxu1 %v491_v25  ;;  %v492_v32 = vmax.f32 %v382_v27, 0.0 }
 0x12a   :  { %v387_v30 = vpop.f32.mrf.mxu0  ;;  %715 = vmatmul.mubr.f32.gmra.mxu1 %v490_v26 }
 0x12b   :  { %v493_v31 = vmax.f32 %v384_v29, 0.0  ;;  %v388_v33 = vadd.f32 %v387_v30, %v1682_v13 }
 0x12c   :  { %v389_v34 = vpop.f32.mrf.mxu0 }
 0x12d   :  { %v390_v35 = vadd.f32 %v389_v34, %v1684_v14  ;;  %719 = vmatprep.mubr.f32.mxu1 %v493_v31  ;;  %v494_v38 = vmax.f32 %v388_v33, 0.0 }
 0x12e   :  { %v393_v36 = vpop.f32.mrf.mxu0  ;;  %720 = vmatmul.mubr.f32.gmra.mxu1 %v492_v32 }
 0x12f   :  { %v495_v37 = vmax.f32 %v390_v35, 0.0  ;;  %v394_v39 = vadd.f32 %v393_v36, %v1682_v13  ;;  %v1753_v36 = vld [vmem:[%s1834_s4] ss:$0 sm:$0xff] }
 0x130   :  { %v395_v40 = vpop.f32.mrf.mxu0 }
 0x131   :  { %v396_v41 = vadd.f32 %v395_v40, %v1684_v14  ;;  %724 = vmatprep.mubr.f32.mxu1 %v495_v37  ;;  %v496_v44 = vmax.f32 %v394_v39, 0.0 }
 0x132   :  { %v399_v42 = vpop.f32.mrf.mxu0  ;;  %725 = vmatmul.mubr.f32.gmra.mxu1 %v494_v38 }
 0x133   :  { %v497_v43 = vmax.f32 %v396_v41, 0.0  ;;  %v400_v45 = vadd.f32 %v399_v42, %v1682_v13 }
 0x134   :  { %v401_v46 = vpop.f32.mrf.mxu0 }
 0x135   :  { %v402_v47 = vadd.f32 %v401_v46, %v1684_v14  ;;  %729 = vmatprep.mubr.f32.mxu1 %v497_v43  ;;  %v498_v50 = vmax.f32 %v400_v45, 0.0 }
 0x136   :  { %v405_v48 = vpop.f32.mrf.mxu0  ;;  %730 = vmatmul.mubr.f32.gmra.mxu1 %v496_v44 }
 0x137   :  { %v499_v49 = vmax.f32 %v402_v47, 0.0  ;;  %v406_v51 = vadd.f32 %v405_v48, %v1682_v13 }
 0x138   :  { %v407_v52 = vpop.f32.mrf.mxu0 }
 0x139   :  { %v408_v53 = vadd.f32 %v407_v52, %v1684_v14  ;;  %734 = vmatprep.mubr.f32.mxu1 %v499_v49  ;;  %v500_v56 = vmax.f32 %v406_v51, 0.0 }
 0x13a   :  { %v411_v54 = vpop.f32.mrf.mxu0  ;;  %735 = vmatmul.mubr.f32.gmra.mxu1 %v498_v50 }
 0x13b   :  { %v501_v55 = vmax.f32 %v408_v53, 0.0  ;;  %v412_v57 = vadd.f32 %v411_v54, %v1682_v13 }
 0x13c   :  { %v413_v58 = vpop.f32.mrf.mxu0 }
 0x13d   :  { %v414_v59 = vadd.f32 %v413_v58, %v1684_v14  ;;  %739 = vmatprep.mubr.f32.mxu1 %v501_v55  ;;  %v502_v62 = vmax.f32 %v412_v57, 0.0 }
 0x13e   :  { %v417_v60 = vpop.f32.mrf.mxu0  ;;  %740 = vmatmul.mubr.f32.gmra.mxu1 %v500_v56 }
 0x13f   :  { %v503_v61 = vmax.f32 %v414_v59, 0.0  ;;  %v418_v63 = vadd.f32 %v417_v60, %v1682_v13 }
 0x140   :  { %v419_v1 = vpop.f32.mrf.mxu0 }
 0x141   :  { %v420_v2 = vadd.f32 %v419_v1, %v1684_v14  ;;  %744 = vmatprep.mubr.f32.mxu1 %v503_v61  ;;  %v504_v5 = vmax.f32 %v418_v63, 0.0 }
 0x142   :  { %v423_v3 = vpop.f32.mrf.mxu0  ;;  %745 = vmatmul.mubr.f32.gmra.mxu1 %v502_v62 }
 0x143   :  { %v505_v4 = vmax.f32 %v420_v2, 0.0  ;;  %v424_v6 = vadd.f32 %v423_v3, %v1682_v13 }
 0x144   :  { %v425_v7 = vpop.f32.mrf.mxu0 }
 0x145   :  { %v426_v8 = vadd.f32 %v425_v7, %v1684_v14  ;;  %749 = vmatprep.mubr.f32.mxu1 %v505_v4  ;;  %v506_v11 = vmax.f32 %v424_v6, 0.0 }
 0x146   :  { %v429_v9 = vpop.f32.mrf.mxu0  ;;  %750 = vmatmul.mubr.f32.gmra.mxu1 %v504_v5 }
 0x147   :  { %v507_v10 = vmax.f32 %v426_v8, 0.0  ;;  %v430_v12 = vadd.f32 %v429_v9, %v1682_v13 }
 0x148   :  { %v431_v15 = vpop.f32.mrf.mxu0 }
 0x149   :  { %v432_v0 = vadd.f32 %v431_v15, %v1684_v14  ;;  %754 = vmatprep.mubr.f32.mxu1 %v507_v10  ;;  %v508_v18 = vmax.f32 %v430_v12, 0.0 }
 0x14a   :  { %v435_v16 = vpop.f32.mrf.mxu0  ;;  %755 = vmatmul.mubr.f32.gmra.mxu1 %v506_v11 }
 0x14b   :  { %v509_v17 = vmax.f32 %v432_v0, 0.0  ;;  %v436_v19 = vadd.f32 %v435_v16, %v1682_v13 }
 0x14c   :  { %v437_v20 = vpop.f32.mrf.mxu0 }
 0x14d   :  { %v438_v21 = vadd.f32 %v437_v20, %v1684_v14  ;;  %759 = vmatprep.mubr.f32.mxu1 %v509_v17  ;;  %v510_v24 = vmax.f32 %v436_v19, 0.0 }
 0x14e   :  { %v441_v22 = vpop.f32.mrf.mxu0  ;;  %760 = vmatmul.mubr.f32.gmra.mxu1 %v508_v18 }
 0x14f   :  { %v511_v23 = vmax.f32 %v438_v21, 0.0  ;;  %v442_v25 = vadd.f32 %v441_v22, %v1682_v13 }
 0x150   :  { %v443_v26 = vpop.f32.mrf.mxu0 }
 0x151   :  { %v444_v27 = vadd.f32 %v443_v26, %v1684_v14  ;;  %764 = vmatprep.mubr.f32.mxu1 %v511_v23  ;;  %v512_v30 = vmax.f32 %v442_v25, 0.0 }
 0x152   :  { %v447_v28 = vpop.f32.mrf.mxu0  ;;  %765 = vmatmul.mubr.f32.gmra.mxu1 %v510_v24 }
 0x153   :  { %v513_v29 = vmax.f32 %v444_v27, 0.0  ;;  %v448_v31 = vadd.f32 %v447_v28, %v1682_v13 }
 0x154   :  { %v449_v32 = vpop.f32.mrf.mxu0 }
 0x155   :  { %v450_v33 = vadd.f32 %v449_v32, %v1684_v14  ;;  %769 = vmatprep.mubr.f32.mxu1 %v513_v29  ;;  %v514_v35 = vmax.f32 %v448_v31, 0.0 }
 0x156   :  { %770 = vmatmul.mubr.f32.gmra.mxu1 %v512_v30 }
 0x157   :  { %v515_v34 = vmax.f32 %v450_v33, 0.0 }
 0x159   :  { %774 = vmatprep.mubr.f32.mxu1 %v515_v34 }
 0x15a   :  { %775 = vmatmul.mubr.f32.gmra.mxu1 %v514_v35 }
 0x19e   :  { %v621_v37 = vpop.f32.mrf.mxu1 }
 0x19f   :  { %v622_v38 = vadd.f32 %v1753_v36, %v621_v37 }
 0x1a0   :  { %v623_v39 = vpop.f32.mrf.mxu1 }
 0x1a1   :  { %v780_v40 = vmax.f32 %v622_v38, 0.0 }
 0x1a2   :  { %v626_v13 = vpop.f32.mrf.mxu1 }
 0x1a3   :  { %v627_v41 = vadd.f32 %v1753_v36, %v626_v13  ;;  %1225 = vmatprep.mubr.f32.mxu0 %v780_v40 }
 0x1a4   :  { %v628_v14 = vpop.f32.mrf.mxu1 }
 0x1a5   :  { %v781_v42 = vmax.f32 %v627_v41, 0.0 }
 0x1a6   :  { %v631_v43 = vpop.f32.mrf.mxu1 }
 0x1a7   :  { %v632_v44 = vadd.f32 %v1753_v36, %v631_v43  ;;  %1226 = vmatmul.mubr.f32.vlgmr.msra.gmra.mxu0 %v781_v42 }
 0x1a8   :  { %v633_v45 = vpop.f32.mrf.mxu1 }
 0x1a9   :  { %v782_v46 = vmax.f32 %v632_v44, 0.0 }
 0x1aa   :  { %v636_v47 = vpop.f32.mrf.mxu1 }
 0x1ab   :  { %v637_v48 = vadd.f32 %v1753_v36, %v636_v47  ;;  %1228 = vmatprep.mubr.f32.mxu0 %v782_v46 }
 0x1ac   :  { %v638_v49 = vpop.f32.mrf.mxu1 }
 0x1ad   :  { %v783_v50 = vmax.f32 %v637_v48, 0.0 }
 0x1ae   :  { %v641_v51 = vpop.f32.mrf.mxu1 }
 0x1af   :  { %v642_v52 = vadd.f32 %v1753_v36, %v641_v51  ;;  %1229 = vmatmul.mubr.f32.gmra.mxu0 %v783_v50 }
 0x1b0   :  { %v643_v53 = vpop.f32.mrf.mxu1 }
 0x1b1   :  { %v784_v54 = vmax.f32 %v642_v52, 0.0 }
 0x1b2   :  { %v646_v55 = vpop.f32.mrf.mxu1 }
 0x1b3   :  { %v647_v56 = vadd.f32 %v1753_v36, %v646_v55  ;;  %1231 = vmatprep.mubr.f32.mxu0 %v784_v54 }
 0x1b4   :  { %v648_v57 = vpop.f32.mrf.mxu1 }
 0x1b5   :  { %v785_v58 = vmax.f32 %v647_v56, 0.0 }
 0x1b6   :  { %v651_v59 = vpop.f32.mrf.mxu1 }
 0x1b7   :  { %v652_v60 = vadd.f32 %v1753_v36, %v651_v59  ;;  %1232 = vmatmul.mubr.f32.gmra.mxu0 %v785_v58 }
 0x1b8   :  { %v653_v61 = vpop.f32.mrf.mxu1 }
 0x1b9   :  { %v786_v62 = vmax.f32 %v652_v60, 0.0 }
 0x1ba   :  { %v656_v63 = vpop.f32.mrf.mxu1 }
 0x1bb   :  { %v657_v1 = vadd.f32 %v1753_v36, %v656_v63  ;;  %1234 = vmatprep.mubr.f32.mxu0 %v786_v62 }
 0x1bc   :  { %v658_v2 = vpop.f32.mrf.mxu1 }
 0x1bd   :  { %v787_v3 = vmax.f32 %v657_v1, 0.0 }
 0x1be   :  { %v661_v4 = vpop.f32.mrf.mxu1 }
 0x1bf   :  { %v662_v5 = vadd.f32 %v1753_v36, %v661_v4  ;;  %1235 = vmatmul.mubr.f32.gmra.mxu0 %v787_v3 }
 0x1c0   :  { %v663_v6 = vpop.f32.mrf.mxu1 }
 0x1c1   :  { %v788_v7 = vmax.f32 %v662_v5, 0.0 }
 0x1c2   :  { %v666_v8 = vpop.f32.mrf.mxu1 }
 0x1c3   :  { %v667_v9 = vadd.f32 %v1753_v36, %v666_v8  ;;  %1237 = vmatprep.mubr.f32.mxu0 %v788_v7 }
 0x1c4   :  { %v668_v10 = vpop.f32.mrf.mxu1 }
 0x1c5   :  { %v789_v11 = vmax.f32 %v667_v9, 0.0 }
 0x1c6   :  { %v671_v12 = vpop.f32.mrf.mxu1 }
 0x1c7   :  { %v672_v15 = vadd.f32 %v1753_v36, %v671_v12  ;;  %1238 = vmatmul.mubr.f32.gmra.mxu0 %v789_v11 }
 0x1c8   :  { %v673_v0 = vpop.f32.mrf.mxu1 }
 0x1c9   :  { %v790_v16 = vmax.f32 %v672_v15, 0.0 }
 0x1ca   :  { %v676_v17 = vpop.f32.mrf.mxu1 }
 0x1cb   :  { %v677_v18 = vadd.f32 %v1753_v36, %v676_v17  ;;  %1240 = vmatprep.mubr.f32.mxu0 %v790_v16 }
 0x1cc   :  { %v678_v19 = vpop.f32.mrf.mxu1 }
 0x1cd   :  { %v791_v20 = vmax.f32 %v677_v18, 0.0 }
 0x1ce   :  { %v681_v21 = vpop.f32.mrf.mxu1 }
 0x1cf   :  { %v682_v22 = vadd.f32 %v1753_v36, %v681_v21  ;;  %1241 = vmatmul.mubr.f32.gmra.mxu0 %v791_v20 }
 0x1d0   :  { %v683_v23 = vpop.f32.mrf.mxu1 }
 0x1d1   :  { %v792_v24 = vmax.f32 %v682_v22, 0.0 }
 0x1d2   :  { %v686_v25 = vpop.f32.mrf.mxu1 }
 0x1d3   :  { %v687_v26 = vadd.f32 %v1753_v36, %v686_v25  ;;  %1243 = vmatprep.mubr.f32.mxu0 %v792_v24 }
 0x1d4   :  { %v688_v27 = vpop.f32.mrf.mxu1 }
 0x1d5   :  { %v793_v28 = vmax.f32 %v687_v26, 0.0 }
 0x1d6   :  { %v691_v29 = vpop.f32.mrf.mxu1 }
 0x1d7   :  { %v692_v30 = vadd.f32 %v1753_v36, %v691_v29  ;;  %1244 = vmatmul.mubr.f32.gmra.mxu0 %v793_v28 }
 0x1d8   :  { %v693_v31 = vpop.f32.mrf.mxu1 }
 0x1d9   :  { %v794_v32 = vmax.f32 %v692_v30, 0.0 }
 0x1da   :  { %v696_v33 = vpop.f32.mrf.mxu1 }
 0x1db   :  { %v697_v34 = vadd.f32 %v1753_v36, %v696_v33  ;;  %1246 = vmatprep.mubr.f32.mxu0 %v794_v32 }
 0x1dc   :  { %v698_v35 = vpop.f32.mrf.mxu1 }
 0x1dd   :  { %v795_v37 = vmax.f32 %v697_v34, 0.0 }
 0x1de   :  { %v701_v38 = vpop.f32.mrf.mxu1 }
 0x1df   :  { %v702_v39 = vadd.f32 %v1753_v36, %v701_v38  ;;  %1247 = vmatmul.mubr.f32.gmra.mxu0 %v795_v37 }
 0x1e0   :  { %v703_v40 = vpop.f32.mrf.mxu1 }
 0x1e1   :  { %v796_v13 = vmax.f32 %v702_v39, 0.0  ;;  %v1790_v39 = vld [vmem:[%s1836_s6] ss:$0 sm:$0xff]  ;;  %s1326_s6 = smov [#allocation5]  }
 0x1e2   :  { %v706_v41 = vpop.f32.mrf.mxu1  ;;  %s1097_s11 = sshll.u32 %s1326_s6, 4  ;;  %s1098_s11 = int_to_ptr.vmem [resolvable:$true] %s1097_s11 }
 0x1e3   :  { %v707_v14 = vadd.f32 %v1753_v36, %v706_v41  ;;  %1249 = vmatprep.mubr.f32.mxu0 %v796_v13  ;;  %s1298_s12 = scalar_lea.vmem %s1098_s11, 4096  ;;  %p1303_p6 = scmp.lt.s32.totalorder %s1098_s11, %s1098_s11 }
 0x1e4   :  { %v708_v42 = vpop.f32.mrf.mxu1  ;;  %p1299_p5 = scmp.ne.s32.totalorder %s1098_s11, %s1298_s12  ;;  %p1304_p7 = scmp.lt.s32.totalorder %s1298_s12, %s1298_s12 }
 0x1e5   :  { %v797_v43 = vmax.f32 %v707_v14, 0.0 }
 0x1e6   :  { %v711_v44 = vpop.f32.mrf.mxu1  ;;  %p1305_p8 = por %p1304_p7, %p1303_p6 }
 0x1e7   :  { %v712_v45 = vadd.f32 %v1753_v36, %v711_v44  ;;  %1250 = vmatmul.mubr.f32.gmra.mxu0 %v797_v43 }
 0x1e8   :  { %v713_v46 = vpop.f32.mrf.mxu1  ;;  %p1306_p9 = pnand %p1305_p8, %p1299_p5 }
 0x1e9   :  { %v798_v47 = vmax.f32 %v712_v45, 0.0 }
 0x1ea   :  { %v716_v48 = vpop.f32.mrf.mxu1 }
 0x1eb   :  { %v717_v49 = vadd.f32 %v1753_v36, %v716_v48  ;;  %1252 = vmatprep.mubr.f32.mxu0 %v798_v47 }
 0x1ec   :  { %v718_v50 = vpop.f32.mrf.mxu1 }
 0x1ed   :  { %v799_v51 = vmax.f32 %v717_v49, 0.0 }
 0x1ee   :  { %v721_v52 = vpop.f32.mrf.mxu1 }
 0x1ef   :  { %v722_v53 = vadd.f32 %v1753_v36, %v721_v52  ;;  %1253 = vmatmul.mubr.f32.gmra.mxu0 %v799_v51 }
 0x1f0   :  { %v723_v54 = vpop.f32.mrf.mxu1 }
 0x1f1   :  { %v800_v55 = vmax.f32 %v722_v53, 0.0 }
 0x1f2   :  { %v726_v56 = vpop.f32.mrf.mxu1 }
 0x1f3   :  { %v727_v57 = vadd.f32 %v1753_v36, %v726_v56  ;;  %1255 = vmatprep.mubr.f32.mxu0 %v800_v55 }
 0x1f4   :  { %v728_v58 = vpop.f32.mrf.mxu1 }
 0x1f5   :  { %v801_v59 = vmax.f32 %v727_v57, 0.0 }
 0x1f6   :  { %v731_v60 = vpop.f32.mrf.mxu1 }
 0x1f7   :  { %v732_v61 = vadd.f32 %v1753_v36, %v731_v60  ;;  %1256 = vmatmul.mubr.f32.gmra.mxu0 %v801_v59 }
 0x1f8   :  { %v733_v62 = vpop.f32.mrf.mxu1 }
 0x1f9   :  { %v802_v63 = vmax.f32 %v732_v61, 0.0 }
 0x1fa   :  { %v736_v1 = vpop.f32.mrf.mxu1 }
 0x1fb   :  { %v737_v2 = vadd.f32 %v1753_v36, %v736_v1  ;;  %1258 = vmatprep.mubr.f32.mxu0 %v802_v63 }
 0x1fc   :  { %v738_v3 = vpop.f32.mrf.mxu1 }
 0x1fd   :  { %v803_v4 = vmax.f32 %v737_v2, 0.0 }
 0x1fe   :  { %v741_v5 = vpop.f32.mrf.mxu1 }
 0x1ff   :  { %v742_v6 = vadd.f32 %v1753_v36, %v741_v5  ;;  %1259 = vmatmul.mubr.f32.gmra.mxu0 %v803_v4 }
 0x200   :  { %v743_v7 = vpop.f32.mrf.mxu1 }
 0x201   :  { %v804_v8 = vmax.f32 %v742_v6, 0.0 }
 0x202   :  { %v746_v9 = vpop.f32.mrf.mxu1 }
 0x203   :  { %v747_v10 = vadd.f32 %v1753_v36, %v746_v9  ;;  %1261 = vmatprep.mubr.f32.mxu0 %v804_v8 }
 0x204   :  { %v748_v11 = vpop.f32.mrf.mxu1 }
 0x205   :  { %v805_v12 = vmax.f32 %v747_v10, 0.0 }
 0x206   :  { %v751_v15 = vpop.f32.mrf.mxu1 }
 0x207   :  { %v752_v0 = vadd.f32 %v1753_v36, %v751_v15  ;;  %1262 = vmatmul.mubr.f32.gmra.mxu0 %v805_v12 }
 0x208   :  { %v753_v16 = vpop.f32.mrf.mxu1 }
 0x209   :  { %v806_v17 = vmax.f32 %v752_v0, 0.0 }
 0x20a   :  { %v756_v18 = vpop.f32.mrf.mxu1 }
 0x20b   :  { %v757_v19 = vadd.f32 %v1753_v36, %v756_v18  ;;  %1264 = vmatprep.mubr.f32.mxu0 %v806_v17 }
 0x20c   :  { %v758_v20 = vpop.f32.mrf.mxu1 }
 0x20d   :  { %v807_v21 = vmax.f32 %v757_v19, 0.0 }
 0x20e   :  { %v761_v22 = vpop.f32.mrf.mxu1 }
 0x20f   :  { %v762_v23 = vadd.f32 %v1753_v36, %v761_v22  ;;  %1265 = vmatmul.mubr.f32.gmra.mxu0 %v807_v21 }
 0x210   :  { %v763_v24 = vpop.f32.mrf.mxu1 }
 0x211   :  { %v808_v25 = vmax.f32 %v762_v23, 0.0 }
 0x212   :  { %v766_v26 = vpop.f32.mrf.mxu1 }
 0x213   :  { %v767_v27 = vadd.f32 %v1753_v36, %v766_v26  ;;  %1267 = vmatprep.mubr.f32.mxu0 %v808_v25 }
 0x214   :  { %v768_v28 = vpop.f32.mrf.mxu1 }
 0x215   :  { %v809_v29 = vmax.f32 %v767_v27, 0.0 }
 0x216   :  { %v771_v30 = vpop.f32.mrf.mxu1 }
 0x217   :  { %v772_v31 = vadd.f32 %v1753_v36, %v771_v30  ;;  %1268 = vmatmul.mubr.f32.gmra.mxu0 %v809_v29 }
 0x218   :  { %v773_v32 = vpop.f32.mrf.mxu1 }
 0x219   :  { %v810_v33 = vmax.f32 %v772_v31, 0.0 }
 0x21a   :  { %v776_v34 = vpop.f32.mrf.mxu1 }
 0x21b   :  { %v777_v35 = vadd.f32 %v1753_v36, %v776_v34  ;;  %1270 = vmatprep.mubr.f32.mxu0 %v810_v33 }
 0x21c   :  { %v778_v37 = vpop.f32.mrf.mxu1 }
 0x21d   :  { %v811_v38 = vmax.f32 %v777_v35, 0.0 }
 0x21f   :  { %1271 = vmatmul.mubr.f32.gmra.mxu0 %v811_v38 }
 0x267   :  { %v1227_v40 = vpop.f32.mrf.mxu0 }
 0x268   :  { %v907_v13 = vadd.f32 %v1227_v40, %v1790_v39 }
 0x269   :  { %v901_v41 = vpop.f32.mrf.mxu0 }
 0x26a   :  { %1061 = vst [vmem:[#allocation5 + $0x8] sm:$0xff] %v907_v13  ;;  %v902_v14 = vadd.f32 %v1790_v39, %v901_v41 }
 0x26c   :  { %1060 = vst [vmem:[#allocation5] sm:$0xff] %v902_v14 }
 0x26f   :  { %v1230_v42 = vpop.f32.mrf.mxu0 }
 0x270   :  { %v917_v36 = vadd.f32 %v1230_v42, %v1790_v39 }
 0x271   :  { %v911_v43 = vpop.f32.mrf.mxu0 }
 0x272   :  { %1063 = vst [vmem:[#allocation5 + $0x18] sm:$0xff] %v917_v36  ;;  %v912_v44 = vadd.f32 %v1790_v39, %v911_v43 }
 0x274   :  { %1062 = vst [vmem:[#allocation5 + $0x10] sm:$0xff] %v912_v44 }
 0x277   :  { %v1233_v45 = vpop.f32.mrf.mxu0 }
 0x278   :  { %v927_v46 = vadd.f32 %v1233_v45, %v1790_v39 }
 0x279   :  { %v921_v47 = vpop.f32.mrf.mxu0 }
 0x27a   :  { %1065 = vst [vmem:[#allocation5 + $0x28] sm:$0xff] %v927_v46  ;;  %v922_v48 = vadd.f32 %v1790_v39, %v921_v47 }
 0x27c   :  { %1064 = vst [vmem:[#allocation5 + $0x20] sm:$0xff] %v922_v48 }
 0x27f   :  { %v1236_v49 = vpop.f32.mrf.mxu0 }
 0x280   :  { %v937_v50 = vadd.f32 %v1236_v49, %v1790_v39 }
 0x281   :  { %v931_v51 = vpop.f32.mrf.mxu0 }
 0x282   :  { %1067 = vst [vmem:[#allocation5 + $0x38] sm:$0xff] %v937_v50  ;;  %v932_v52 = vadd.f32 %v1790_v39, %v931_v51 }
 0x284   :  { %1066 = vst [vmem:[#allocation5 + $0x30] sm:$0xff] %v932_v52 }
 0x287   :  { %v1239_v53 = vpop.f32.mrf.mxu0 }
 0x288   :  { %v947_v54 = vadd.f32 %v1239_v53, %v1790_v39 }
 0x289   :  { %v941_v55 = vpop.f32.mrf.mxu0 }
 0x28a   :  { %1069 = vst [vmem:[#allocation5 + $0x48] sm:$0xff] %v947_v54  ;;  %v942_v56 = vadd.f32 %v1790_v39, %v941_v55 }
 0x28c   :  { %1068 = vst [vmem:[#allocation5 + $0x40] sm:$0xff] %v942_v56 }
 0x28f   :  { %v1242_v57 = vpop.f32.mrf.mxu0 }
 0x290   :  { %v957_v58 = vadd.f32 %v1242_v57, %v1790_v39 }
 0x291   :  { %v951_v59 = vpop.f32.mrf.mxu0 }
 0x292   :  { %1071 = vst [vmem:[#allocation5 + $0x58] sm:$0xff] %v957_v58  ;;  %v952_v60 = vadd.f32 %v1790_v39, %v951_v59 }
 0x294   :  { %1070 = vst [vmem:[#allocation5 + $0x50] sm:$0xff] %v952_v60 }
 0x297   :  { %v1245_v61 = vpop.f32.mrf.mxu0 }
 0x298   :  { %v967_v62 = vadd.f32 %v1245_v61, %v1790_v39 }
 0x299   :  { %v961_v63 = vpop.f32.mrf.mxu0 }
 0x29a   :  { %1073 = vst [vmem:[#allocation5 + $0x68] sm:$0xff] %v967_v62  ;;  %v962_v1 = vadd.f32 %v1790_v39, %v961_v63 }
 0x29c   :  { %1072 = vst [vmem:[#allocation5 + $0x60] sm:$0xff] %v962_v1 }
 0x29f   :  { %v1248_v2 = vpop.f32.mrf.mxu0 }
 0x2a0   :  { %v977_v3 = vadd.f32 %v1248_v2, %v1790_v39 }
 0x2a1   :  { %v971_v4 = vpop.f32.mrf.mxu0 }
 0x2a2   :  { %1075 = vst [vmem:[#allocation5 + $0x78] sm:$0xff] %v977_v3  ;;  %v972_v5 = vadd.f32 %v1790_v39, %v971_v4 }
 0x2a4   :  { %1074 = vst [vmem:[#allocation5 + $0x70] sm:$0xff] %v972_v5 }
 0x2a7   :  { %v1251_v6 = vpop.f32.mrf.mxu0 }
 0x2a8   :  { %v987_v7 = vadd.f32 %v1251_v6, %v1790_v39 }
 0x2a9   :  { %v981_v8 = vpop.f32.mrf.mxu0 }
 0x2aa   :  { %1077 = vst [vmem:[#allocation5 + $0x88] sm:$0xff] %v987_v7  ;;  %v982_v9 = vadd.f32 %v1790_v39, %v981_v8 }
 0x2ac   :  { %1076 = vst [vmem:[#allocation5 + $0x80] sm:$0xff] %v982_v9 }
 0x2af   :  { %v1254_v10 = vpop.f32.mrf.mxu0 }
 0x2b0   :  { %v997_v11 = vadd.f32 %v1254_v10, %v1790_v39 }
 0x2b1   :  { %v991_v12 = vpop.f32.mrf.mxu0 }
 0x2b2   :  { %1079 = vst [vmem:[#allocation5 + $0x98] sm:$0xff] %v997_v11  ;;  %v992_v15 = vadd.f32 %v1790_v39, %v991_v12 }
 0x2b4   :  { %1078 = vst [vmem:[#allocation5 + $0x90] sm:$0xff] %v992_v15 }
 0x2b7   :  { %v1257_v0 = vpop.f32.mrf.mxu0 }
 0x2b8   :  { %v1007_v16 = vadd.f32 %v1257_v0, %v1790_v39 }
 0x2b9   :  { %v1001_v17 = vpop.f32.mrf.mxu0 }
 0x2ba   :  { %1081 = vst [vmem:[#allocation5 + $0xa8] sm:$0xff] %v1007_v16  ;;  %v1002_v18 = vadd.f32 %v1790_v39, %v1001_v17 }
 0x2bc   :  { %1080 = vst [vmem:[#allocation5 + $0xa0] sm:$0xff] %v1002_v18 }
 0x2bf   :  { %v1260_v19 = vpop.f32.mrf.mxu0 }
 0x2c0   :  { %v1017_v20 = vadd.f32 %v1260_v19, %v1790_v39 }
 0x2c1   :  { %v1011_v21 = vpop.f32.mrf.mxu0 }
 0x2c2   :  { %1083 = vst [vmem:[#allocation5 + $0xb8] sm:$0xff] %v1017_v20  ;;  %v1012_v22 = vadd.f32 %v1790_v39, %v1011_v21 }
 0x2c4   :  { %1082 = vst [vmem:[#allocation5 + $0xb0] sm:$0xff] %v1012_v22 }
 0x2c7   :  { %v1263_v23 = vpop.f32.mrf.mxu0 }
 0x2c8   :  { %v1027_v24 = vadd.f32 %v1263_v23, %v1790_v39 }
 0x2c9   :  { %v1021_v25 = vpop.f32.mrf.mxu0 }
 0x2ca   :  { %1085 = vst [vmem:[#allocation5 + $0xc8] sm:$0xff] %v1027_v24  ;;  %v1022_v26 = vadd.f32 %v1790_v39, %v1021_v25 }
 0x2cc   :  { %1084 = vst [vmem:[#allocation5 + $0xc0] sm:$0xff] %v1022_v26 }
 0x2cf   :  { %v1266_v27 = vpop.f32.mrf.mxu0 }
 0x2d0   :  { %v1037_v28 = vadd.f32 %v1266_v27, %v1790_v39 }
 0x2d1   :  { %v1031_v29 = vpop.f32.mrf.mxu0 }
 0x2d2   :  { %1087 = vst [vmem:[#allocation5 + $0xd8] sm:$0xff] %v1037_v28  ;;  %v1032_v30 = vadd.f32 %v1790_v39, %v1031_v29 }
 0x2d4   :  { %1086 = vst [vmem:[#allocation5 + $0xd0] sm:$0xff] %v1032_v30 }
 0x2d7   :  { %v1269_v31 = vpop.f32.mrf.mxu0 }
 0x2d8   :  { %v1047_v32 = vadd.f32 %v1269_v31, %v1790_v39 }
 0x2d9   :  { %v1041_v33 = vpop.f32.mrf.mxu0 }
 0x2da   :  { %1089 = vst [vmem:[#allocation5 + $0xe8] sm:$0xff] %v1047_v32  ;;  %v1042_v34 = vadd.f32 %v1790_v39, %v1041_v33 }
 0x2dc   :  { %1088 = vst [vmem:[#allocation5 + $0xe0] sm:$0xff] %v1042_v34 }
 0x2df   :  { %v1272_v35 = vpop.f32.mrf.mxu0 }
 0x2e0   :  { %v1057_v37 = vadd.f32 %v1272_v35, %v1790_v39 }
 0x2e1   :  { %v1051_v38 = vpop.f32.mrf.mxu0 }
 0x2e2   :  { %1091 = vst [vmem:[#allocation5 + $0xf8] sm:$0xff] %v1057_v37  ;;  %v1052_v40 = vadd.f32 %v1790_v39, %v1051_v38 }
 0x2e4   :  { %1090 = vst [vmem:[#allocation5 + $0xf0] sm:$0xff] %v1052_v40 }
 0x2e5   :  { %1309 = shalt.err (!%p1306_p9)
}
 0x2e6   :  { %1103 = dma.vmem_to_hbm [thread:$0]  %s1098_s11, 4096, %s1837_s7, [#allocation4], %s1323_s27, %s1323_s27, %s1324_s28  }
 0x2e7   :  { %1320 = dma.done.wait [#allocation4], 4096  }
 0x2e8   :  { %1321 = vsyncadd [#allocation4], 4294963200 }
 0x2e9   :  { %1107 = vsyncpa [#allocation3], 1 }
 0x2ea   :  { %1108 = vsyncpa [#allocation4], 1 }

</bundles_post_ra>
